<compile_context>
chip_gen: v7x
topology: tpu7x:2x2x1
jax: 0.10.0
libtpu: 0.0.40
codegen_flags: <defaults>
</compile_context>

<pallas_src>
import functools

import jax
import jax.numpy as jnp
from jax.experimental import pallas as pl
from jax.experimental.pallas import tpu as pltpu


# ----------------------------- kernels ---------------------------------------


def _pool_gate_kernel(x_ref, w1_ref, b1_ref, w2t_ref, b2_ref, g_ref, acc_ref, *, inv_hw):
    """Pass 1: global average pool over HW (tiled) + cSE channel gate.

    x_ref block: (1, C, THW); g_ref block: (1, C, 1); acc_ref scratch: (C, 1) f32.
    """
    t = pl.program_id(1)

    @pl.when(t == 0)
    def _():
        acc_ref[...] = jnp.zeros_like(acc_ref)

    x = x_ref[0].astype(jnp.float32)                       # (C, THW)
    acc_ref[...] += jnp.sum(x, axis=-1, keepdims=True)     # (C, 1) partial channel sums

    @pl.when(t == pl.num_programs(1) - 1)
    def _():
        pooled = acc_ref[...] * inv_hw                     # (C, 1) global average pool (f32)
        # Tiny cSE MLP, computed ONCE per batch on VPU + XLU (no degenerate MXU matmuls).
        h = jnp.sum(w1_ref[...] * pooled, axis=0, keepdims=True) + b1_ref[...]    # (1, Cr)
        h = jnp.maximum(h, 0.0)                                                    # ReLU
        g = jax.nn.sigmoid(
            jnp.sum(w2t_ref[...] * h, axis=1, keepdims=True) + b2_ref[...])        # (C, 1)
        g_ref[0] = g


def _apply_kernel(x_ref, g_ref, wsr_ref, bs_ref, o_ref):
    """Pass 2: per HW tile, out = x * (cSE_gate + sSE_gate).

    x_ref/o_ref block: (1, C, THW); g_ref block: (1, C, 1); wsr: (1, C); bs: (1,) in SMEM.
    """
    x = x_ref[0]                                           # (C, THW)
    xf = x.astype(jnp.float32)
    # sSE gate: (1, C) @ (C, THW) -> (1, THW); lane-dense result, MXU is otherwise idle here.
    sse = jax.nn.sigmoid(
        jnp.dot(wsr_ref[...], xf, preferred_element_type=jnp.float32) + bs_ref[0])
    # Factored combine: cSE broadcasts along lanes, sSE along sublanes; one add + one mul.
    # TODO(synk): on v6e/v7x with bf16 activations the combine could stay in bf16.
    gate = g_ref[0] + sse                                  # (C, THW) f32
    o_ref[0] = (xf * gate).astype(o_ref.dtype)


# ----------------------------- wrapper ----------------------------------------


def _choose_hw_tile(HW, C, itemsize, block_budget_bytes=2 * 1024 * 1024):
    """Largest multiple-of-128 tile that divides HW, fits the per-block VMEM budget,
    and (when possible) leaves >= 2 grid steps along HW for pipeline overlap."""
    if HW % 128 != 0:
        return HW  # small / ragged spatial extent: take the whole (lane-full) row
    max_thw = max(128, (block_budget_bytes // (itemsize * C)) // 128 * 128)
    candidates = [t for t in range(128, HW + 1, 128) if HW % t == 0 and t <= max_thw]
    if not candidates:
        return 128
    for t in reversed(candidates):
        if HW // t >= 2:
            return t
    return candidates[-1]


def scse_forward(x_nchw, w1, b1, w2, b2, ws, bs):
    """x_nchw: (B, C, H, W). Weights in (in, out) matmul convention:
    w1:(C,Cr) b1:(1,Cr)  w2:(Cr,C) b2:(1,C)  ws:(C,1) bs:(1,1)."""
    B, C, H, W = x_nchw.shape
    HW = H * W
    Cr = w1.shape[1]

    x = x_nchw.reshape(B, C, HW)            # free reshape of NCHW: no transposes

    THW = _choose_hw_tile(HW, C, jnp.dtype(x.dtype).itemsize)
    NT = HW // THW

    # Parameter layouts for the (C, HW) kernel layout (tiny, one-time XLA reshapes).
    w2t = w2.T                              # (C, Cr)
    b1r = b1.reshape(1, Cr)
    b2c = b2.reshape(C, 1)
    wsr = ws.reshape(1, C)
    bs1 = bs.reshape(1).astype(jnp.float32)

    # ---- pass 1: pooled mean + cSE gate ----
    gate = pl.pallas_call(
        functools.partial(_pool_gate_kernel, inv_hw=1.0 / HW),
        out_shape=jax.ShapeDtypeStruct((B, C, 1), jnp.float32),
        grid_spec=pltpu.PrefetchScalarGridSpec(
            num_scalar_prefetch=0,
            grid=(B, NT),
            in_specs=[
                pl.BlockSpec((1, C, THW), lambda b, t: (b, 0, t)),   # x tile
                pl.BlockSpec((C, Cr), lambda b, t: (0, 0)),          # w1
                pl.BlockSpec((1, Cr), lambda b, t: (0, 0)),          # b1
                pl.BlockSpec((C, Cr), lambda b, t: (0, 0)),          # w2^T
                pl.BlockSpec((C, 1), lambda b, t: (0, 0)),           # b2
            ],
            out_specs=pl.BlockSpec((1, C, 1), lambda b, t: (b, 0, 0)),
            scratch_shapes=[pltpu.VMEM((C, 1), jnp.float32)],
        ),
        compiler_params=pltpu.CompilerParams(
            dimension_semantics=("parallel", "arbitrary")),
    )(x, w1, b1r, w2t, b2c)

    # ---- pass 2: apply x * (cSE + sSE) per HW tile ----
    out = pl.pallas_call(
        _apply_kernel,
        out_shape=jax.ShapeDtypeStruct((B, C, HW), x.dtype),
        grid_spec=pltpu.PrefetchScalarGridSpec(
            num_scalar_prefetch=0,
            grid=(B, NT),
            in_specs=[
                pl.BlockSpec((1, C, THW), lambda b, t: (b, 0, t)),   # x tile
                pl.BlockSpec((1, C, 1), lambda b, t: (b, 0, 0)),     # cSE gate
                pl.BlockSpec((1, C), lambda b, t: (0, 0)),           # ws (row)
                pl.BlockSpec(memory_space=pltpu.MemorySpace.SMEM),   # bs scalar
            ],
            out_specs=pl.BlockSpec((1, C, THW), lambda b, t: (b, 0, t)),
        ),
        compiler_params=pltpu.CompilerParams(
            dimension_semantics=("parallel", "parallel")),
    )(x, gate, wsr, bs1)

    return out.reshape(B, C, H, W)


# ----------------------------- reference --------------------------------------


def scse_reference(x_nchw, w1, b1, w2, b2, ws, bs):
    """Pure-JAX reference mirroring the PyTorch module semantics."""
    B, C, H, W = x_nchw.shape
    x = jnp.transpose(x_nchw, (0, 2, 3, 1)).reshape(B, H * W, C).astype(jnp.float32)
    pooled = jnp.mean(x, axis=1, keepdims=True)                        # (B,1,C)
    h = jnp.maximum(pooled @ w1 + b1, 0.0)                             # (B,1,Cr)
    cse = jax.nn.sigmoid(h @ w2 + b2)                                  # (B,1,C)
    sse = jax.nn.sigmoid(x @ ws + bs)                                  # (B,HW,1)
    out = x * cse + x * sse
    return jnp.transpose(out.reshape(B, H, W, C), (0, 3, 1, 2))


if __name__ == "__main__":
    # Module hyperparameters (in_channels >= reduction so the bottleneck is nonzero).
    B, C, H, W = 2, 32, 16, 16
    reduction = 16
    Cr = C // reduction  # 2

    key = jax.random.PRNGKey(0)
    kx, k1, k2, k3, k4, k5, k6 = jax.random.split(key, 7)

    x = jax.random.normal(kx, (B, C, H, W), dtype=jnp.float32)

    # Deterministic synthetic parameters (1x1 convs == dense layers over channels),
    # stored in (in, out) matmul convention; PyTorch conv weight (out,in,1,1) == w.T.
    w1 = jax.random.normal(k1, (C, Cr), dtype=jnp.float32) * 0.1   # cSE conv1: C -> Cr
    b1 = jax.random.normal(k2, (1, Cr), dtype=jnp.float32) * 0.1
    w2 = jax.random.normal(k3, (Cr, C), dtype=jnp.float32) * 0.1   # cSE conv2: Cr -> C
    b2 = jax.random.normal(k4, (1, C), dtype=jnp.float32) * 0.1
    ws = jax.random.normal(k5, (C, 1), dtype=jnp.float32) * 0.1    # sSE conv: C -> 1
    bs = jax.random.normal(k6, (1, 1), dtype=jnp.float32) * 0.1

    out = scse_forward(x, w1, b1, w2, b2, ws, bs)
    out = jax.block_until_ready(out)

    ref = scse_reference(x, w1, b1, w2, b2, ws, bs)
    assert out.shape == (B, C, H, W)
    assert jnp.allclose(out, ref, atol=1e-5, rtol=1e-5), "mismatch vs reference"

    print("KERNEL_OK")
</pallas_src>

<mosaic_0001>
module attributes {stable_mosaic.version = 11 : i64} {
  func.func @_pool_gate_kernel(%arg0: i32, %arg1: i32, %arg2: memref<1x32x128xf32, #tpu.memory_space<vmem>>, %arg3: memref<32x2xf32, #tpu.memory_space<vmem>>, %arg4: memref<1x2xf32, #tpu.memory_space<vmem>>, %arg5: memref<32x2xf32, #tpu.memory_space<vmem>>, %arg6: memref<32x1xf32, #tpu.memory_space<vmem>>, %arg7: memref<1x32x1xf32, #tpu.memory_space<vmem>>, %arg8: memref<32x1xf32, #tpu.memory_space<vmem>>) attributes {dimension_semantics = [#tpu.dimension_semantics<parallel>, #tpu.dimension_semantics<arbitrary>], iteration_bounds = array<i64: 2, 2>, scalar_prefetch = 0 : i64, scratch_operands = 1 : i64, tpu.core_type = #tpu.core_type<tc>, window_params = [{transform_indices = @transform_0, window_bounds = array<i64: 1, 32, 128>}, {pipeline_mode = #tpu.pipeline_mode<synchronous>, transform_indices = @transform_1, window_bounds = array<i64: 32, 2>}, {pipeline_mode = #tpu.pipeline_mode<synchronous>, transform_indices = @transform_2, window_bounds = array<i64: 1, 2>}, {pipeline_mode = #tpu.pipeline_mode<synchronous>, transform_indices = @transform_3, window_bounds = array<i64: 32, 2>}, {pipeline_mode = #tpu.pipeline_mode<synchronous>, transform_indices = @transform_4, window_bounds = array<i64: 32, 1>}, {transform_indices = @transform_5, window_bounds = array<i64: 1, 32, 1>}]} {
    %c0_i32 = arith.constant 0 : i32
    %0 = arith.cmpi eq, %arg1, %c0_i32 : i32
    %1 = arith.extui %0 : i1 to i32
    %c0_i32_0 = arith.constant 0 : i32
    %2 = arith.cmpi ne, %1, %c0_i32_0 : i32
    scf.if %2 {
      %cst_8 = arith.constant 0.000000e+00 : f32
      %13 = vector.broadcast %cst_8 : f32 to vector<32x1xf32>
      %c0_9 = arith.constant 0 : index
      %c0_10 = arith.constant 0 : index
      %14 = vector.load %arg8[%c0_9, %c0_10] : memref<32x1xf32, #tpu.memory_space<vmem>>, vector<32x1xf32>
      tpu.vector_store %arg8[%c0_9, %c0_10], %13 {strides = array<i32>} : memref<32x1xf32, #tpu.memory_space<vmem>>, vector<32x1xf32>,
    } else {
    }
    %c0 = arith.constant 0 : index
    %c0_1 = arith.constant 0 : index
    %c0_2 = arith.constant 0 : index
    %3 = vector.load %arg2[%c0, %c0_1, %c0_2] : memref<1x32x128xf32, #tpu.memory_space<vmem>>, vector<1x32x128xf32>
    %4 = vector.shape_cast %3 : vector<1x32x128xf32> to vector<32x128xf32>
    %c0_3 = arith.constant 0 : index
    %c0_4 = arith.constant 0 : index
    %5 = vector.load %arg8[%c0_3, %c0_4] : memref<32x1xf32, #tpu.memory_space<vmem>>, vector<32x1xf32>
    %cst = arith.constant dense<0.000000e+00> : vector<32xf32>
    %6 = vector.multi_reduction <add>, %4, %cst [1] : vector<32x128xf32> to vector<32xf32>
    %7 = vector.shape_cast %6 : vector<32xf32> to vector<32x1xf32>
    %8 = arith.addf %5, %7 : vector<32x1xf32>
    %c0_5 = arith.constant 0 : index
    %c0_6 = arith.constant 0 : index
    %9 = vector.load %arg8[%c0_5, %c0_6] : memref<32x1xf32, #tpu.memory_space<vmem>>, vector<32x1xf32>
    tpu.vector_store %arg8[%c0_5, %c0_6], %8 {strides = array<i32>} : memref<32x1xf32, #tpu.memory_space<vmem>>, vector<32x1xf32>,
    %c1_i32 = arith.constant 1 : i32
    %10 = arith.cmpi eq, %arg1, %c1_i32 : i32
    %11 = arith.extui %10 : i1 to i32
    %c0_i32_7 = arith.constant 0 : i32
    %12 = arith.cmpi ne, %11, %c0_i32_7 : i32
    scf.if %12 {
      %c0_8 = arith.constant 0 : index
      %c0_9 = arith.constant 0 : index
      %13 = vector.load %arg8[%c0_8, %c0_9] : memref<32x1xf32, #tpu.memory_space<vmem>>, vector<32x1xf32>
      %cst_10 = arith.constant 3.906250e-03 : f32
      %14 = vector.broadcast %cst_10 : f32 to vector<32x1xf32>
      %15 = arith.mulf %13, %14 : vector<32x1xf32>
      %c0_11 = arith.constant 0 : index
      %c0_12 = arith.constant 0 : index
      %16 = vector.load %arg3[%c0_11, %c0_12] : memref<32x2xf32, #tpu.memory_space<vmem>>, vector<32x2xf32>
      %17 = vector.broadcast %15 : vector<32x1xf32> to vector<32x2xf32>
      %18 = arith.mulf %16, %17 : vector<32x2xf32>
      %cst_13 = arith.constant dense<0.000000e+00> : vector<2xf32>
      %19 = vector.multi_reduction <add>, %18, %cst_13 [0] : vector<32x2xf32> to vector<2xf32>
      %20 = vector.shape_cast %19 : vector<2xf32> to vector<1x2xf32>
      %c0_14 = arith.constant 0 : index
      %c0_15 = arith.constant 0 : index
      %21 = vector.load %arg4[%c0_14, %c0_15] : memref<1x2xf32, #tpu.memory_space<vmem>>, vector<1x2xf32>
      %22 = arith.addf %20, %21 : vector<1x2xf32>
      %cst_16 = arith.constant 0.000000e+00 : f32
      %23 = vector.broadcast %cst_16 : f32 to vector<1x2xf32>
      %24 = arith.maximumf %22, %23 : vector<1x2xf32>
      %c0_17 = arith.constant 0 : index
      %c0_18 = arith.constant 0 : index
      %25 = vector.load %arg5[%c0_17, %c0_18] : memref<32x2xf32, #tpu.memory_space<vmem>>, vector<32x2xf32>
      %26 = vector.broadcast %24 : vector<1x2xf32> to vector<32x2xf32>
      %27 = arith.mulf %25, %26 : vector<32x2xf32>
      %cst_19 = arith.constant dense<0.000000e+00> : vector<32xf32>
      %28 = vector.multi_reduction <add>, %27, %cst_19 [1] : vector<32x2xf32> to vector<32xf32>
      %29 = vector.shape_cast %28 : vector<32xf32> to vector<32x1xf32>
      %c0_20 = arith.constant 0 : index
      %c0_21 = arith.constant 0 : index
      %30 = vector.load %arg6[%c0_20, %c0_21] : memref<32x1xf32, #tpu.memory_space<vmem>>, vector<32x1xf32>
      %31 = arith.addf %29, %30 : vector<32x1xf32>
      %32 = arith.negf %31 : vector<32x1xf32>
      %33 = math.exp %32 : vector<32x1xf32>
      %cst_22 = arith.constant 1.000000e+00 : f32
      %34 = vector.broadcast %cst_22 : f32 to vector<32x1xf32>
      %35 = arith.addf %34, %33 : vector<32x1xf32>
      %36 = arith.divf %34, %35 : vector<32x1xf32>
      %c0_23 = arith.constant 0 : index
      %c0_24 = arith.constant 0 : index
      %c0_25 = arith.constant 0 : index
      %37 = vector.load %arg7[%c0_23, %c0_24, %c0_25] : memref<1x32x1xf32, #tpu.memory_space<vmem>>, vector<1x32x1xf32>
      %38 = vector.shape_cast %37 : vector<1x32x1xf32> to vector<32x1xf32>
      %39 = vector.shape_cast %36 : vector<32x1xf32> to vector<1x32x1xf32>
      tpu.vector_store %arg7[%c0_23, %c0_24, %c0_25], %39 {strides = array<i32>} : memref<1x32x1xf32, #tpu.memory_space<vmem>>, vector<1x32x1xf32>,
    } else {
    }
    return
  }
  func.func @transform_0(%arg0: i32, %arg1: i32) -> (i32, i32, i32) {
    %c0_i32 = arith.constant 0 : i32
    %c0_i32_0 = arith.constant 0 : i32
    return %arg0, %c0_i32, %arg1 : i32, i32, i32
  }
  func.func @transform_1(%arg0: i32, %arg1: i32) -> (i32, i32) {
    %c0_i32 = arith.constant 0 : i32
    %c0_i32_0 = arith.constant 0 : i32
    %c0_i32_1 = arith.constant 0 : i32
    return %c0_i32, %c0_i32_0 : i32, i32
  }
  func.func @transform_2(%arg0: i32, %arg1: i32) -> (i32, i32) {
    %c0_i32 = arith.constant 0 : i32
    %c0_i32_0 = arith.constant 0 : i32
    %c0_i32_1 = arith.constant 0 : i32
    return %c0_i32, %c0_i32_0 : i32, i32
  }
  func.func @transform_3(%arg0: i32, %arg1: i32) -> (i32, i32) {
    %c0_i32 = arith.constant 0 : i32
    %c0_i32_0 = arith.constant 0 : i32
    %c0_i32_1 = arith.constant 0 : i32
    return %c0_i32, %c0_i32_0 : i32, i32
  }
  func.func @transform_4(%arg0: i32, %arg1: i32) -> (i32, i32) {
    %c0_i32 = arith.constant 0 : i32
    %c0_i32_0 = arith.constant 0 : i32
    %c0_i32_1 = arith.constant 0 : i32
    return %c0_i32, %c0_i32_0 : i32, i32
  }
  func.func @transform_5(%arg0: i32, %arg1: i32) -> (i32, i32, i32) {
    %c0_i32 = arith.constant 0 : i32
    %c0_i32_0 = arith.constant 0 : i32
    %c0_i32_1 = arith.constant 0 : i32
    return %arg0, %c0_i32, %c0_i32_0 : i32, i32, i32
  }
}

</mosaic_0001>

<bundles_post_ra>
// kernel: tpu_custom_call.1
= control target key start
LH: loop header
LB: loop body
LE: loop exit
PB: predicated region body
PF: predicated region fallthrough
CT: control target
= control target key end

     0   :  { %10 = vsyncpa [#allocation4], 0  ;;  %s953_s0 = inlined_call_operand.hbm [shape: f32[2,32,256], index: 0, kind: input, shape index: {}]   ;;  %s954_s1 = inlined_call_operand.vmem [shape: f32[32,2], index: 1, kind: input, shape index: {}]   ;;  %s955_s2 = inlined_call_operand.vmem [shape: f32[1,2], index: 2, kind: input, shape index: {}]   ;;  %s956_s3 = inlined_call_operand.vmem [shape: f32[32,2], index: 3, kind: input, shape index: {}]   ;;  %s957_s4 = inlined_call_operand.vmem [shape: f32[32,1], index: 4, kind: input, shape index: {}]   ;;  %s958_s5 = inlined_call_operand.vmem [shape: f32[2,32,1], index: 5, kind: output, shape index: {}]  }
   0x1   :  { %12 = vsyncpa [#allocation4 + $0x1], 0  ;;  %s739_s18 = smov 0   ;;  %s741_s19 = smov 0  }
   0x2   :  { %s743_s20 = smov 0   ;;  %s745_s21 = smov 0  }
   0x3   :  { %s747_s22 = smov 0   ;;  %s749_s23 = smov 0  }
   0x4   :  { %s751_s24 = smov 0   ;;  %s753_s25 = smov 0  }
   0x5 LB: > { %s491_s26 = sadd.s32 4294967295, %s701_s25   ;;  %s27_s27 = sadd.s32 1, %s693_s23  ;;  %s701_s25 = sphi %s753_s25, %s18_s25   ;;  %s697_s24 = sphi %s751_s24, %s972_s24   ;;  %s693_s23 = sphi %s749_s23, %s971_s23   ;;  %s689_s22 = sphi %s747_s22, %s970_s22   ;;  %s685_s21 = sphi %s745_s21, %s969_s21   ;;  %s681_s20 = sphi %s743_s20, %s968_s20   ;;  %s677_s19 = sphi %s741_s19, %s967_s19   ;;  %s673_s18 = sphi %s739_s18, %s966_s18  }
   0x6   : > { %p28_p0 = scmp.ge.s32.totalorder %s27_s27, 2  ;;  %s30_s28 = sadd.s32 1, %s697_s24 }
   0x7   : > { %s39_s29 = sadd.s32 1, %s681_s20  ;;  %p46_p1 = scmp.ne.s32.totalorder %s681_s20, %s677_s19 }
   0x8   : > { %s974_s27 = smov (%p28_p0, %s27_s27), 0  ;;  %s976_s28 = smov (!%p28_p0, %s30_s28), %s697_s24 }
   0x9   : > { %960 = sst [smem:[#allocation6_spill]] %s974_s27  ;;  %s35_s30 = ssub.s32 %s693_s23, %s974_s27 }
   0xa   : > { %p47_p2 = scmp.eq.s32.totalorder %s701_s25, 0  ;;  %p32_p3 = scmp.ge.s32.totalorder %s976_s28, 2 }
   0xb   : > { %p52_p4 = scmp.ne.s32.totalorder %s677_s19, %s673_s18  ;;  %p53_p6 = scmp.eq.s32.totalorder %s491_s26, 0 }
   0xc   : > { %p790_p5 = por %p47_p2, %p46_p1  ;;  %s978_s28 = smov (%p32_p3, %s976_s28), 0 }
   0xd   : > { %p796_p7 = por %p53_p6, %p52_p4  ;;  %s34_s8 = ssub.s32 %s697_s24, %s978_s28 }
   0xe   : > { %p517_p8 = scmp.lt.s32.totalorder %s701_s25, 4  ;;  %s36_s9 = sor.u32 %s35_s30, %s34_s8 }
   0xf   : > { %s198_s10 = sand.u32 1, %s681_s20   ;;  %p37_p9 = scmp.eq.s32.totalorder %s36_s9, 0 }
  0x10   : > { %s495_s11 = sshll.u32 %s198_s10, 5  ;;  %s496_s12 = sshll.u32 %s697_s24, 3 }
  0x11   : > { %s806_s13 = scalar_select %p37_p9, %s681_s20, %s39_s29  }
  0x12   : > { %s207_s14 = sadd.s32 %s693_s23, %s496_s12  ;;  %s202_s16 = scalar_lea.vmem [#allocation3], %s495_s11 }
  0x13   : > { %s497_s15 = sshll.u32 %s207_s14, 7  ;;  %s210_s17 = sshll.u32 %s202_s16, 4  ;;  %s814_s17 = int_to_ptr.vmem [resolvable:$true] %s210_s17 }
  0x14   : > { %s812_s27 = scalar_lea.hbm %s953_s0, %s497_s15  ;;  %p820_p10 = pnand %p517_p8, %p790_p5 }
  0x15   : > { %s825_s30 = scalar_lea.sflag [#allocation4], %s198_s10  ;;  %s605_s8 = scalar_lea.hbm %s812_s27, 512 }
  0x16   : > { %p606_p12 = scmp.ne.s32.totalorder %s812_s27, %s605_s8  ;;  %p607_p13 = pneg %p820_p10 }
  0x17   : > { %s610_s11 = scalar_lea.hbm %s953_s0, 2048  ;;  %p611_p2 = scmp.lt.u32.totalorder %s812_s27, %s953_s0 }
  0x18   : > { %p608_p0 = pnand %p607_p13, %p606_p12  ;;  %p612_p3 = scmp.lt.u32.totalorder %s610_s11, %s605_s8 }
  0x19   : > { %p614_p5 = scmp.lt.u32.totalorder %s605_s8, %s812_s27 }
  0x1a   : > { %p609_p1 = pneg %p608_p0  ;;  %p613_p4 = por %p612_p3, %p611_p2 }
  0x1c   : > { %p615_p6 = por %p614_p5, %p613_p4 }
  0x1e   : > { %p616_p8 = pnand %p615_p6, %p609_p1 }
  0x20   : > { %619 = shalt.err (!%p616_p8)
}
  0x21   : > { %s620_s10 = scalar_lea.vmem %s814_s17, 512  ;;  %s703_s15 = smov [#allocation3]  }
  0x22   : > { %p621_p9 = scmp.ne.s32.totalorder %s814_s17, %s620_s10  ;;  %s625_s16 = sshll.u32 %s703_s15, 4  ;;  %s626_s16 = int_to_ptr.vmem [resolvable:$false] %s625_s16 }
  0x23   : > { %s627_s18 = scalar_lea.vmem %s626_s16, 1024  ;;  %p628_p11 = scmp.lt.s32.totalorder %s814_s17, %s626_s16 }
  0x24   : > { %p623_p12 = pnand %p621_p9, %p607_p13  ;;  %p629_p2 = scmp.lt.s32.totalorder %s627_s18, %s620_s10 }
  0x26   : > { %p624_p0 = pneg %p623_p12  ;;  %p630_p3 = por %p629_p2, %p628_p11 }
  0x28   : > { %p631_p4 = pnand %p630_p3, %p624_p0 }
  0x2a   : > { %634 = shalt.err (!%p631_p4)
}
  0x2b   : > { %s704_s26 = smov 256   ;;  %s705_s8 = smov 128  }
  0x2c   : > { %s706_s9 = smov 8   ;;  %p218_p13 = scmp.lt.s32.totalorder %s701_s25, 5 }
  0x2d   : > { %516 = dma.hbm_to_vmem [thread:$0]  (!%p820_p10), %s812_s27, 512, %s814_s17, %s825_s30, %s704_s26, %s705_s8, %s706_s9  }
  0x2e   : > { %p964_p1 = scmp.ge.s32.totalorder %s701_s25, 1 }
  0x30   : > { %p219_p5 = pnand %p964_p1, %p218_p13 }
  0x31   : > { %s224_s6 = sand.u32 (!%p219_p5), 1, %s677_s19  }
  0x32   : > { %222 = sbr.rel (%p219_p5) target bundleno = 563 (0x233), region = 40  ;;  %s499_s11 = sshll.u32 (!%p219_p5), %s224_s6, 5 }
  0x33   : > { %s225_s12 = scalar_lea.sflag (!%p219_p5), [#allocation4], %s224_s6  ;;  %s228_s14 = scalar_lea.vmem (!%p219_p5), [#allocation3], %s499_s11 }
  0x39   : > { %668 = dma.done.wait (%p796_p7), %s225_s12, 512  }
  0x3a   : > { %670 = vsyncadd (%p796_p7), %s225_s12, 4294966784  ;;  %p255_p11 = scmp.lt.s32.totalorder %s689_s22, 1  ;;  %p502_p10 = scmp.ne.s32.totalorder %s685_s21, 0 }
  0x3b   : > { %vm264_vm0 = vcmask (!%p502_p10), 7168   ;;  %v707_v0 = vmov (!%p502_p10), 0.0  }
  0x3c   : > { %s980_s22 = smov (!%p255_p11, %s689_s22), 1  ;;  %263 = sbr.rel (%p502_p10) target bundleno = 67 (0x43), region = 48 }
  0x3d   : > { %s510_s27 = sshll.u32 %s980_s22, 5  ;;  %265 = vst.msk [vmem:[#allocation2] sm:$0xff] (!%p502_p10), %vm264_vm0, %v707_v0  ;;  %266 = vst.msk [vmem:[#allocation2 + $0x8] sm:$0xff] (!%p502_p10), %vm264_vm0, %v707_v0 }
  0x3e   : > { %s866_s30 = scalar_lea.vmem %s958_s5, %s510_s27  ;;  %267 = vst.msk [vmem:[#allocation2 + $0x10] sm:$0xff] (!%p502_p10), %vm264_vm0, %v707_v0  ;;  %268 = vst.msk [vmem:[#allocation2 + $0x18] sm:$0xff] (!%p502_p10), %vm264_vm0, %v707_v0 }
  0x43 PF: > { %v271_v1 = vld [vmem:[%s228_s14 + $0x10] sm:$0xff]  ;;  %v269_v2 = vld [vmem:[%s228_s14] sm:$0xff]  ;;  %v272_v3 = vld [vmem:[%s228_s14 + $0x18] sm:$0xff]  ;;  %vm289_vm1 = vcmask 7168   ;;  %p503_p7 = scmp.ne.s32.totalorder %s685_s21, 1 }
  0x44   : > { %281 = vadd.xlane.f32.xlu1 %v271_v1  ;;  %277 = vadd.xlane.f32.xlu0 %v269_v2  ;;  %v270_v4 = vld [vmem:[%s228_s14 + $0x8] sm:$0xff]  ;;  %v273_v6 = vld [vmem:[#allocation2] sm:$0xff]  ;;  %v708_v20 = vmov (!%p503_p7), 0   ;;  %v308_v29 = vld [vmem:[%s954_s1 + $0x10] sm:$0xff] (!%p503_p7)  ;;  %vm334_vm2 = vcmask (!%p503_p7), 15360   ;;  %v355_v48 = vlaneseq (!%p503_p7) }
  0x45   : > { %v275_v5 = vld [vmem:[#allocation2 + $0x10] sm:$0xff]  ;;  %v276_v11 = vld [vmem:[#allocation2 + $0x18] sm:$0xff]  ;;  %v274_v12 = vld [vmem:[#allocation2 + $0x8] sm:$0xff]  ;;  %588 = vset.pattern.permute.xlu1 (!%p503_p7), %v708_v20  ;;  %587 = vset.pattern.permute.xlu0 (!%p503_p7), %v708_v20 }
  0x46   : > { %v306_v27 = vld [vmem:[%s954_s1] sm:$0xff] (!%p503_p7)  ;;  %v307_v30 = vld [vmem:[%s954_s1 + $0x8] sm:$0xff] (!%p503_p7)  ;;  %v309_v32 = vld [vmem:[%s954_s1 + $0x18] sm:$0xff] (!%p503_p7)  ;;  %v356_v51 = vshrl.u32 (!%p503_p7), %v355_v48, 7 }
  0x47   : > { %v348_v52 = vld [vmem:[%s955_s2] sm:$0x1] (!%p503_p7)  ;;  %v352_v57 = vld [vmem:[%s956_s3 + $0x8] sm:$0xff] (!%p503_p7)  ;;  %v353_v60 = vld [vmem:[%s956_s3 + $0x10] sm:$0xff] (!%p503_p7) }
  0x48   : > { %283 = vadd.xlane.f32.xlu1 %v272_v3  ;;  %279 = vadd.xlane.f32.xlu0 %v270_v4  ;;  %v357_v55 = vsub.s32 (!%p503_p7), 0, %v356_v51  ;;  %v351_v58 = vld [vmem:[%s956_s3] sm:$0xff] (!%p503_p7)  ;;  %v354_v2 = vld [vmem:[%s956_s3 + $0x18] sm:$0xff] (!%p503_p7) }
  0xd1   : > { %v282_v7 = vpop.xlane.xlu1 %281  ;;  %v278_v8 = vpop.xlane.xlu0 %277 }
  0xd2   : > { %v287_v9 = vadd.f32 %v282_v7, %v275_v5  ;;  %v285_v10 = vadd.f32 %v278_v8, %v273_v6  ;;  %297 = sbr.rel (%p503_p7) target bundleno = 563 (0x233), region = 52  ;;  %v376_v6 = vld [vmem:[%s957_s4 + $0x8] sm:$0xff] (!%p503_p7)  ;;  %v375_v7 = vld [vmem:[%s957_s4] sm:$0xff] (!%p503_p7) }
  0xd4   : > { %292 = vst.msk [vmem:[#allocation2 + $0x10] sm:$0xff] %vm289_vm1, %v287_v9  ;;  %290 = vst.msk [vmem:[#allocation2] sm:$0xff] %vm289_vm1, %v285_v10 }
  0xd5   : > { %v284_v13 = vpop.xlane.xlu1 %283  ;;  %v280_v14 = vpop.xlane.xlu0 %279 }
  0xd6   : > { %v288_v15 = vadd.f32 %v284_v13, %v276_v11  ;;  %v286_v16 = vadd.f32 %v280_v14, %v274_v12  ;;  %v377_v12 = vld [vmem:[%s957_s4 + $0x10] sm:$0xff] (!%p503_p7) }
  0xd8   : > { %293 = vst.msk [vmem:[#allocation2 + $0x18] sm:$0xff] %vm289_vm1, %v288_v15  ;;  %291 = vst.msk [vmem:[#allocation2 + $0x8] sm:$0xff] %vm289_vm1, %v286_v16 }
  0xdb   : > { %v300_v17 = vld [vmem:[#allocation2 + $0x10] sm:$0xff]  ;;  %v298_v18 = vld [vmem:[#allocation2] sm:$0xff] }
  0xdc   : > { %v304_v21 = vmul.f32 0.00390625, %v300_v17  ;;  %v302_v22 = vmul.f32 0.00390625, %v298_v18  ;;  %v378_v17 = vld [vmem:[%s957_s4 + $0x18] sm:$0xff] }
  0xde   : > { %322 = vperm.xlu1 %588, %v304_v21   ;;  %312 = vperm.xlu0 %587, %v302_v22  }
  0xdf   : > { %v301_v19 = vld [vmem:[#allocation2 + $0x18] sm:$0xff]  ;;  %v299_v23 = vld [vmem:[#allocation2 + $0x8] sm:$0xff] }
  0xe0   : > { %v305_v24 = vmul.f32 0.00390625, %v301_v19  ;;  %v303_v25 = vmul.f32 0.00390625, %v299_v23 }
  0xe2   : > { %327 = vperm.xlu1 %588, %v305_v24   ;;  %317 = vperm.xlu0 %587, %v303_v25  }
 0x15d   : > { %v323_v26 = vpop.permute.xlu1 %322  ;;  %v313_v28 = vpop.permute.xlu0 %312 }
 0x15e   : > { %v330_v31 = vmul.f32 %v313_v28, %v306_v27  ;;  %v332_v35 = vmul.f32 %v323_v26, %v308_v29 }
 0x160   : > { %v335_v37 = vsel %vm334_vm2, %v330_v31, 0.0  ;;  %v338_v41 = vsel %vm334_vm2, %v332_v35, 0.0 }
 0x161   : > { %v328_v33 = vpop.permute.xlu1 %327  ;;  %v318_v34 = vpop.permute.xlu0 %317 }
 0x162   : > { %v331_v36 = vmul.f32 %v318_v34, %v307_v30  ;;  %v333_v38 = vmul.f32 %v328_v33, %v309_v32 }
 0x164   : > { %v336_v39 = vsel %vm334_vm2, %v331_v36, 0.0  ;;  %v340_v43 = vsel %vm334_vm2, %v333_v38, 0.0 }
 0x165   : > { %v337_v40 = vadd.f32 %v336_v39, %v335_v37 }
 0x167   : > { %v339_v42 = vadd.f32 %v338_v41, %v337_v40 }
 0x169   : > { %v341_v44 = vadd.f32 %v340_v43, %v339_v42 }
 0x16b   : > { %v342_v45 = vrot.slane %v341_v44, 4 }
 0x16d   : > { %v343_v46 = vadd.f32 %v342_v45, %v341_v44 }
 0x16f   : > { %v344_v47 = vrot.slane %v343_v46, 2 }
 0x171   : > { %v345_v49 = vadd.f32 %v344_v47, %v343_v46 }
 0x173   : > { %v346_v50 = vrot.slane %v345_v49, 1 }
 0x175   : > { %v347_v53 = vadd.f32 %v346_v50, %v345_v49 }
 0x177   : > { %v349_v54 = vadd.f32 %v348_v52, %v347_v53 }
 0x179   : > { %v350_v56 = vmax.f32 %v349_v54, 0.0 }
 0x17b   : > { %v358_v59 = vrot.slane %v350_v56, %v357_v55 }
 0x17d   : > { %v360_v61 = vmul.f32 %v358_v59, %v352_v57  ;;  %v359_v62 = vmul.f32 %v358_v59, %v351_v58  ;;  %v361_v1 = vmul.f32 %v358_v59, %v353_v60  ;;  %v362_v4 = vmul.f32 %v358_v59, %v354_v2 }
 0x17f   : > { %v366_v63 = vsel %vm334_vm2, %v360_v61, 0.0  ;;  %v363_v0 = vsel %vm334_vm2, %v359_v62, 0.0  ;;  %v369_v3 = vsel %vm334_vm2, %v361_v1, 0.0  ;;  %v372_v5 = vsel %vm334_vm2, %v362_v4, 0.0 }
 0x180   : > { %367 = vadd.xlane.f32.xlu1 %v366_v63  ;;  %364 = vadd.xlane.f32.xlu0 %v363_v0 }
 0x184   : > { %370 = vadd.xlane.f32.xlu0 %v369_v3 }
 0x188   : > { %373 = vadd.xlane.f32.xlu0 %v372_v5 }
 0x20d   : > { %v368_v8 = vpop.xlane.xlu1 %367  ;;  %v365_v9 = vpop.xlane.xlu0 %364 }
 0x20e   : > { %v380_v10 = vadd.f32 %v376_v6, %v368_v8  ;;  %v379_v11 = vadd.f32 %v375_v7, %v365_v9 }
 0x210   : > { %v505_v13 = vmul.f32 -1.442695, %v380_v10  ;;  %v504_v14 = vmul.f32 -1.442695, %v379_v11 }
 0x211   : > { %v371_v15 = vpop.xlane.xlu0 %370 }
 0x212   : > { %589 = vpow2.f32 %v505_v13  ;;  %v381_v16 = vadd.f32 %v377_v12, %v371_v15 }
 0x213   : > { %591 = vpow2.f32 %v504_v14 }
 0x214   : > { %v506_v18 = vmul.f32 -1.442695, %v381_v16 }
 0x215   : > { %v374_v19 = vpop.xlane.xlu0 %373 }
 0x216   : > { %593 = vpow2.f32 %v506_v18  ;;  %v382_v20 = vadd.f32 %v378_v17, %v374_v19 }
 0x218   : > { %v507_v21 = vmul.f32 -1.442695, %v382_v20 }
 0x21a   : > { %595 = vpow2.f32 %v507_v21 }
 0x21c   : > { %v590_v22 = vpop.eup %589 }
 0x21d   : > { %v592_v23 = vpop.eup %591  ;;  %v396_v24 = vadd.f32 1.0, %v590_v22 }
 0x21e   : > { %v395_v25 = vadd.f32 1.0, %v592_v23 }
 0x21f   : > { %597 = vrcp.f32 %v396_v24 }
 0x220   : > { %v594_v26 = vpop.eup %593  ;;  %599 = vrcp.f32 %v395_v25 }
 0x221   : > { %v397_v27 = vadd.f32 1.0, %v594_v26 }
 0x223   : > { %601 = vrcp.f32 %v397_v27 }
 0x224   : > { %v596_v28 = vpop.eup %595 }
 0x225   : > { %v398_v29 = vadd.f32 1.0, %v596_v28 }
 0x227   : > { %603 = vrcp.f32 %v398_v29 }
 0x229   : > { %v598_v30 = vpop.eup %597 }
 0x22a   : > { %v600_v31 = vpop.eup %599  ;;  %408 = vst.msk [vmem:[%s866_s30 + $0x8] sm:$0xff] %vm289_vm1, %v598_v30 }
 0x22b   : > { %407 = vst.msk [vmem:[%s866_s30] sm:$0xff] %vm289_vm1, %v600_v31 }
 0x22d   : > { %v602_v32 = vpop.eup %601 }
 0x22e   : > { %409 = vst.msk [vmem:[%s866_s30 + $0x10] sm:$0xff] %vm289_vm1, %v602_v32 }
 0x231   : > { %v604_v33 = vpop.eup %603 }
 0x232   : > { %410 = vst.msk [vmem:[%s866_s30 + $0x18] sm:$0xff] %vm289_vm1, %v604_v33 }
 0x233 PF: > { %s18_s25 = sadd.s32 1, %s701_s25   ;;  %s965_s9 = sld [smem:[#allocation6_spill]] }
 0x234   : > { %p15_p6 = scmp.ge.s32.totalorder %s18_s25, 6   ;;  %s966_s18 = smov %s677_s19 }
 0x235   : > { %s967_s19 = smov %s681_s20  ;;  %s968_s20 = smov %s806_s13 }
 0x236   : > { %s969_s21 = smov %s693_s23  ;;  %s970_s22 = smov %s697_s24 }
 0x237   : > { %s972_s24 = smov %s978_s28  ;;  %17 = sbr.rel (!%p15_p6) target bundleno = 5 (0x5), region = 88 }
 0x239   : > { %s971_s23 = smov %s965_s9 }
 0x23e   :  { %432 = vsyncpa [#allocation4], 1 }
 0x23f   :  { %434 = vsyncpa [#allocation4 + $0x1], 1 }

</bundles_post_ra>
